<compile_context>
chip_gen: v7x
topology: tpu7x:2x2x1
jax: 0.10.0
libtpu: 0.0.40
codegen_flags: <defaults>
</compile_context>

<pallas_src>
import jax
import jax.numpy as jnp
import numpy as np
from jax.experimental import pallas as pl
from jax.experimental.pallas import tpu as pltpu

NUM_CLASS = 3


def _pick_h_tile(H: int, target: int = 256) -> int:
    """Largest multiple-of-32 divisor of H that is <= target, else whole H."""
    if H <= target:
        return H
    for ht in range(target - (target % 32), 31, -32):
        if H % ht == 0:
            return ht
    return H  # fallback: whole image rows in one block


def _active_contour_kernel(pred_ref, label_ref, out_ref, acc_ref):
    # pred_ref  : (1, C, Ht, W) f32  VMEM
    # label_ref : (1, Ht, W)    i8   VMEM
    # out_ref   : (1, C, 1)     f32  VMEM (resident across the H-tile axis)
    # acc_ref   : (C, W)        f32  VMEM scratch (per-class lane accumulator)
    k = pl.program_id(1)

    @pl.when(k == 0)
    def _init():
        acc_ref[...] = jnp.zeros_like(acc_ref)

    # Widen the packed int8 labels once per tile; compare in int32.
    lab = label_ref[0].astype(jnp.int32)                  # (Ht, W)

    for c in range(NUM_CLASS):                            # unrolled: C == 3
        p = pred_ref[0, c]                                # (Ht, W) f32
        # onehot*(1-p) + (1-onehot)*p  ==  where(lab == c, 1 - p, p)
        term = jnp.where(lab == c, 1.0 - p, p)            # (Ht, W)
        partial = jnp.sum(term, axis=0, keepdims=True)    # (1, W) sublane reduce
        acc_ref[c:c + 1, :] = acc_ref[c:c + 1, :] + partial

    @pl.when(k == pl.num_programs(1) - 1)
    def _finalize():
        totals = jnp.sum(acc_ref[...], axis=1, keepdims=True)   # (C, 1) cross-lane reduce
        out_ref[...] = totals[None, :, :]                       # (1, C, 1)


def active_contour_loss(y_pred, y_true, class_weight):
    """JAX/Pallas equivalent of ActiveContourLoss.forward."""
    B, C, H, W = y_pred.shape
    assert C == NUM_CLASS

    Ht = _pick_h_tile(H)
    K = H // Ht

    per_bc = pl.pallas_call(
        _active_contour_kernel,
        out_shape=jax.ShapeDtypeStruct((B, C, 1), jnp.float32),
        grid_spec=pltpu.PrefetchScalarGridSpec(
            num_scalar_prefetch=0,
            grid=(B, K),                                   # reduction axis (H tiles) last
            in_specs=[
                pl.BlockSpec((1, C, Ht, W), lambda b, k: (b, 0, k, 0)),  # y_pred tile
                pl.BlockSpec((1, Ht, W), lambda b, k: (b, k, 0)),        # int8 labels tile
            ],
            out_specs=pl.BlockSpec((1, C, 1), lambda b, k: (b, 0, 0)),
            scratch_shapes=[pltpu.VMEM((C, W), jnp.float32)],
        ),
        compiler_params=pltpu.CompilerParams(
            dimension_semantics=("parallel", "arbitrary")),
    )(y_pred.astype(jnp.float32), y_true.astype(jnp.int8))

    # Tiny (B, C) epilogue in plain JAX: class weighting + normalization.
    w = class_weight.astype(jnp.float32)
    active = per_bc[:, :, 0]                               # (B, C)
    loss = jnp.sum(active * w)
    return loss / (jnp.sum(w) * B * H * W)


def _reference(y_pred, y_true, class_weight):
    """Pure-JAX reference mirroring the PyTorch forward exactly."""
    B, C, H, W = y_pred.shape
    onehot = jax.nn.one_hot(y_true, C, axis=1, dtype=jnp.float32)  # (B, C, H, W)
    active = jnp.sum(onehot * (1.0 - y_pred) + (1.0 - onehot) * y_pred, axis=(-2, -1))
    loss = jnp.sum(active * class_weight.astype(jnp.float32))
    return loss / (jnp.sum(class_weight.astype(jnp.float32)) * B * H * W)


if __name__ == "__main__":
    key = jax.random.PRNGKey(0)
    k1, k2 = jax.random.split(key)

    B, H, W = 2, 16, 16
    y_pred = jax.random.uniform(k1, (B, NUM_CLASS, H, W), dtype=jnp.float32)
    y_true = jax.random.randint(k2, (B, H, W), 0, NUM_CLASS, dtype=jnp.int32)
    class_weight = jnp.array([1, 1, 1], dtype=jnp.float32)

    out = active_contour_loss(y_pred, y_true, class_weight)
    out = jax.block_until_ready(out)

    ref = _reference(y_pred, y_true, class_weight)
    np.testing.assert_allclose(np.asarray(out), np.asarray(ref), rtol=1e-5, atol=1e-5)

    print("KERNEL_OK")
</pallas_src>

<mosaic_0001>
module attributes {stable_mosaic.version = 11 : i64} {
  func.func @_active_contour_kernel(%arg0: i32, %arg1: i32, %arg2: memref<1x3x16x16xf32, #tpu.memory_space<vmem>>, %arg3: memref<1x16x16xi8, #tpu.memory_space<vmem>>, %arg4: memref<1x3x1xf32, #tpu.memory_space<vmem>>, %arg5: memref<3x16xf32, #tpu.memory_space<vmem>>) attributes {dimension_semantics = [#tpu.dimension_semantics<parallel>, #tpu.dimension_semantics<arbitrary>], iteration_bounds = array<i64: 2, 1>, scalar_prefetch = 0 : i64, scratch_operands = 1 : i64, tpu.core_type = #tpu.core_type<tc>, window_params = [{transform_indices = @transform_0, window_bounds = array<i64: 1, 3, 16, 16>}, {transform_indices = @transform_1, window_bounds = array<i64: 1, 16, 16>}, {transform_indices = @transform_2, window_bounds = array<i64: 1, 3, 1>}]} {
    %c0_i32 = arith.constant 0 : i32
    %0 = arith.cmpi eq, %arg1, %c0_i32 : i32
    %1 = arith.extui %0 : i1 to i32
    %c0_i32_0 = arith.constant 0 : i32
    %2 = arith.cmpi ne, %1, %c0_i32_0 : i32
    scf.if %2 {
      %cst_33 = arith.constant 0.000000e+00 : f32
      %45 = vector.broadcast %cst_33 : f32 to vector<3x16xf32>
      %c0_34 = arith.constant 0 : index
      %c0_35 = arith.constant 0 : index
      %46 = vector.load %arg5[%c0_34, %c0_35] : memref<3x16xf32, #tpu.memory_space<vmem>>, vector<3x16xf32>
      tpu.vector_store %arg5[%c0_34, %c0_35], %45 {strides = array<i32>} : memref<3x16xf32, #tpu.memory_space<vmem>>, vector<3x16xf32>,
    } else {
    }
    %c0 = arith.constant 0 : index
    %c0_1 = arith.constant 0 : index
    %c0_2 = arith.constant 0 : index
    %3 = vector.load %arg3[%c0, %c0_1, %c0_2] : memref<1x16x16xi8, #tpu.memory_space<vmem>>, vector<1x16x16xi8>
    %4 = vector.shape_cast %3 : vector<1x16x16xi8> to vector<16x16xi8>
    %5 = arith.extsi %4 : vector<16x16xi8> to vector<16x16xi32>
    %c0_3 = arith.constant 0 : index
    %c0_4 = arith.constant 0 : index
    %c0_5 = arith.constant 0 : index
    %c0_6 = arith.constant 0 : index
    %6 = vector.load %arg2[%c0_3, %c0_4, %c0_5, %c0_6] : memref<1x3x16x16xf32, #tpu.memory_space<vmem>>, vector<1x1x16x16xf32>
    %7 = vector.shape_cast %6 : vector<1x1x16x16xf32> to vector<16x16xf32>
    %c0_i32_7 = arith.constant 0 : i32
    %8 = vector.broadcast %c0_i32_7 : i32 to vector<16x16xi32>
    %9 = arith.cmpi eq, %5, %8 : vector<16x16xi32>
    %cst = arith.constant 1.000000e+00 : f32
    %10 = vector.broadcast %cst : f32 to vector<16x16xf32>
    %11 = arith.subf %10, %7 : vector<16x16xf32>
    %12 = arith.select %9, %11, %7 : vector<16x16xi1>, vector<16x16xf32>
    %cst_8 = arith.constant dense<0.000000e+00> : vector<16xf32>
    %13 = vector.multi_reduction <add>, %12, %cst_8 [0] : vector<16x16xf32> to vector<16xf32>
    %14 = vector.shape_cast %13 : vector<16xf32> to vector<1x16xf32>
    %c0_9 = arith.constant 0 : index
    %c0_10 = arith.constant 0 : index
    %15 = vector.load %arg5[%c0_9, %c0_10] : memref<3x16xf32, #tpu.memory_space<vmem>>, vector<1x16xf32>
    %16 = arith.addf %15, %14 : vector<1x16xf32>
    %c0_11 = arith.constant 0 : index
    %c0_12 = arith.constant 0 : index
    %17 = vector.load %arg5[%c0_11, %c0_12] : memref<3x16xf32, #tpu.memory_space<vmem>>, vector<1x16xf32>
    tpu.vector_store %arg5[%c0_11, %c0_12], %16 {strides = array<i32>} : memref<3x16xf32, #tpu.memory_space<vmem>>, vector<1x16xf32>,
    %c0_13 = arith.constant 0 : index
    %c1 = arith.constant 1 : index
    %c0_14 = arith.constant 0 : index
    %c0_15 = arith.constant 0 : index
    %18 = vector.load %arg2[%c0_13, %c1, %c0_14, %c0_15] : memref<1x3x16x16xf32, #tpu.memory_space<vmem>>, vector<1x1x16x16xf32>
    %19 = vector.shape_cast %18 : vector<1x1x16x16xf32> to vector<16x16xf32>
    %c1_i32 = arith.constant 1 : i32
    %20 = vector.broadcast %c1_i32 : i32 to vector<16x16xi32>
    %21 = arith.cmpi eq, %5, %20 : vector<16x16xi32>
    %cst_16 = arith.constant 1.000000e+00 : f32
    %22 = vector.broadcast %cst_16 : f32 to vector<16x16xf32>
    %23 = arith.subf %22, %19 : vector<16x16xf32>
    %24 = arith.select %21, %23, %19 : vector<16x16xi1>, vector<16x16xf32>
    %cst_17 = arith.constant dense<0.000000e+00> : vector<16xf32>
    %25 = vector.multi_reduction <add>, %24, %cst_17 [0] : vector<16x16xf32> to vector<16xf32>
    %26 = vector.shape_cast %25 : vector<16xf32> to vector<1x16xf32>
    %c1_18 = arith.constant 1 : index
    %c0_19 = arith.constant 0 : index
    %27 = vector.load %arg5[%c1_18, %c0_19] : memref<3x16xf32, #tpu.memory_space<vmem>>, vector<1x16xf32>
    %28 = arith.addf %27, %26 : vector<1x16xf32>
    %c1_20 = arith.constant 1 : index
    %c0_21 = arith.constant 0 : index
    %29 = vector.load %arg5[%c1_20, %c0_21] : memref<3x16xf32, #tpu.memory_space<vmem>>, vector<1x16xf32>
    tpu.vector_store %arg5[%c1_20, %c0_21], %28 {strides = array<i32>} : memref<3x16xf32, #tpu.memory_space<vmem>>, vector<1x16xf32>,
    %c0_22 = arith.constant 0 : index
    %c2 = arith.constant 2 : index
    %c0_23 = arith.constant 0 : index
    %c0_24 = arith.constant 0 : index
    %30 = vector.load %arg2[%c0_22, %c2, %c0_23, %c0_24] : memref<1x3x16x16xf32, #tpu.memory_space<vmem>>, vector<1x1x16x16xf32>
    %31 = vector.shape_cast %30 : vector<1x1x16x16xf32> to vector<16x16xf32>
    %c2_i32 = arith.constant 2 : i32
    %32 = vector.broadcast %c2_i32 : i32 to vector<16x16xi32>
    %33 = arith.cmpi eq, %5, %32 : vector<16x16xi32>
    %cst_25 = arith.constant 1.000000e+00 : f32
    %34 = vector.broadcast %cst_25 : f32 to vector<16x16xf32>
    %35 = arith.subf %34, %31 : vector<16x16xf32>
    %36 = arith.select %33, %35, %31 : vector<16x16xi1>, vector<16x16xf32>
    %cst_26 = arith.constant dense<0.000000e+00> : vector<16xf32>
    %37 = vector.multi_reduction <add>, %36, %cst_26 [0] : vector<16x16xf32> to vector<16xf32>
    %38 = vector.shape_cast %37 : vector<16xf32> to vector<1x16xf32>
    %c2_27 = arith.constant 2 : index
    %c0_28 = arith.constant 0 : index
    %39 = vector.load %arg5[%c2_27, %c0_28] : memref<3x16xf32, #tpu.memory_space<vmem>>, vector<1x16xf32>
    %40 = arith.addf %39, %38 : vector<1x16xf32>
    %c2_29 = arith.constant 2 : index
    %c0_30 = arith.constant 0 : index
    %41 = vector.load %arg5[%c2_29, %c0_30] : memref<3x16xf32, #tpu.memory_space<vmem>>, vector<1x16xf32>
    tpu.vector_store %arg5[%c2_29, %c0_30], %40 {strides = array<i32>} : memref<3x16xf32, #tpu.memory_space<vmem>>, vector<1x16xf32>,
    %c0_i32_31 = arith.constant 0 : i32
    %42 = arith.cmpi eq, %arg1, %c0_i32_31 : i32
    %43 = arith.extui %42 : i1 to i32
    %c0_i32_32 = arith.constant 0 : i32
    %44 = arith.cmpi ne, %43, %c0_i32_32 : i32
    scf.if %44 {
      %c0_33 = arith.constant 0 : index
      %c0_34 = arith.constant 0 : index
      %45 = vector.load %arg5[%c0_33, %c0_34] : memref<3x16xf32, #tpu.memory_space<vmem>>, vector<3x16xf32>
      %cst_35 = arith.constant dense<0.000000e+00> : vector<3xf32>
      %46 = vector.multi_reduction <add>, %45, %cst_35 [1] : vector<3x16xf32> to vector<3xf32>
      %47 = vector.shape_cast %46 : vector<3xf32> to vector<3x1xf32>
      %48 = vector.shape_cast %47 : vector<3x1xf32> to vector<1x3x1xf32>
      %c0_36 = arith.constant 0 : index
      %c0_37 = arith.constant 0 : index
      %c0_38 = arith.constant 0 : index
      %49 = vector.load %arg4[%c0_36, %c0_37, %c0_38] : memref<1x3x1xf32, #tpu.memory_space<vmem>>, vector<1x3x1xf32>
      tpu.vector_store %arg4[%c0_36, %c0_37, %c0_38], %48 {strides = array<i32>} : memref<1x3x1xf32, #tpu.memory_space<vmem>>, vector<1x3x1xf32>,
    } else {
    }
    return
  }
  func.func @transform_0(%arg0: i32, %arg1: i32) -> (i32, i32, i32, i32) {
    %c0_i32 = arith.constant 0 : i32
    %c0_i32_0 = arith.constant 0 : i32
    %c0_i32_1 = arith.constant 0 : i32
    return %arg0, %c0_i32, %arg1, %c0_i32_0 : i32, i32, i32, i32
  }
  func.func @transform_1(%arg0: i32, %arg1: i32) -> (i32, i32, i32) {
    %c0_i32 = arith.constant 0 : i32
    %c0_i32_0 = arith.constant 0 : i32
    return %arg0, %arg1, %c0_i32 : i32, i32, i32
  }
  func.func @transform_2(%arg0: i32, %arg1: i32) -> (i32, i32, i32) {
    %c0_i32 = arith.constant 0 : i32
    %c0_i32_0 = arith.constant 0 : i32
    %c0_i32_1 = arith.constant 0 : i32
    return %arg0, %c0_i32, %c0_i32_0 : i32, i32, i32
  }
}

</mosaic_0001>

<bundles_post_ra>
// kernel: tpu_custom_call.1
= control target key start
LH: loop header
LB: loop body
LE: loop exit
PB: predicated region body
PF: predicated region fallthrough
CT: control target
= control target key end

     0   :  { %7 = vsyncpa [#allocation4], 0  ;;  %s820_s0 = inlined_call_operand.hbm [shape: f32[2,3,16,16], index: 0, kind: input, shape index: {}]   ;;  %s821_s1 = inlined_call_operand.hbm [shape: s8[2,16,16], index: 1, kind: input, shape index: {}]   ;;  %s822_s2 = inlined_call_operand.vmem [shape: f32[2,3,1], index: 2, kind: output, shape index: {}]  }
   0x1   :  { %9 = vsyncpa [#allocation4 + $0x1], 0 }
   0x2   :  { %10 = vsyncpa [#allocation6], 0 }
   0x3   :  { %12 = vsyncpa [#allocation6 + $0x1], 0  ;;  %s638_s9 = smov 0   ;;  %s640_s10 = smov 0  }
   0x4   :  { %s642_s11 = smov 0   ;;  %s644_s12 = smov 0  }
   0x5   :  { %s646_s13 = smov 0   ;;  %s648_s14 = smov 0  }
   0x6 LB: > { %s410_s15 = sadd.s32 4294967295, %s614_s14   ;;  %s30_s16 = sadd.s32 1, %s610_s13  ;;  %s614_s14 = sphi %s648_s14, %s18_s14   ;;  %s610_s13 = sphi %s646_s13, %s832_s13   ;;  %s606_s12 = sphi %s644_s12, %s831_s12   ;;  %s602_s11 = sphi %s642_s11, %s830_s11   ;;  %s598_s10 = sphi %s640_s10, %s829_s10   ;;  %s594_s9 = sphi %s638_s9, %s828_s9  }
   0x7   : > { %p32_p0 = scmp.ge.s32.totalorder %s30_s16, 2  ;;  %s39_s17 = sadd.s32 1, %s602_s11 }
   0x8   : > { %p46_p1 = scmp.ne.s32.totalorder %s602_s11, %s598_s10  ;;  %p47_p2 = scmp.eq.s32.totalorder %s614_s14, 0 }
   0x9   : > { %s834_s16 = smov (%p32_p0, %s30_s16), 0  ;;  %p52_p4 = scmp.ne.s32.totalorder %s598_s10, %s594_s9 }
   0xa   : > { %p48_p3 = por %p47_p2, %p46_p1  ;;  %s34_s18 = ssub.s32 %s610_s13, %s834_s16 }
   0xb   : > { %p53_p5 = scmp.eq.s32.totalorder %s410_s15, 0  ;;  %p37_p6 = scmp.eq.s32.totalorder %s34_s18, 0 }
   0xc   : > { %p446_p8 = scmp.lt.s32.totalorder %s614_s14, 2  ;;  %s686_s21 = sand.u32 1, %s602_s11  }
   0xd   : > { %p677_p7 = por %p53_p5, %p52_p4  ;;  %s433_s22 = smul.u32 768, %s610_s13 }
   0xe   : > { %s683_s20 = scalar_select %p37_p6, %s602_s11, %s39_s17  }
   0xf   : > { %s824_s19 = scalar_select %p677_p7, 1, 0 }
  0x10   : > { %s432_s23 = smul.u32 48, %s686_s21  ;;  %s693_s26 = scalar_lea.hbm %s820_s0, %s433_s22 }
  0x11   : > { %p695_p9 = pnand %p446_p8, %p48_p3  ;;  %s131_s30 = scalar_lea.sflag [#allocation4], %s686_s21 }
  0x12   : > { %s134_s28 = scalar_lea.vmem [#allocation3], %s432_s23  ;;  %s500_s3 = scalar_lea.hbm %s693_s26, 768 }
  0x13   : > { %s143_s29 = sshll.u32 %s134_s28, 4  ;;  %p501_p10 = scmp.ne.s32.totalorder %s693_s26, %s500_s3  ;;  %s699_s29 = int_to_ptr.vmem [resolvable:$true] %s143_s29 }
  0x14   : > { %p502_p11 = pneg %p695_p9  ;;  %s505_s6 = scalar_lea.hbm %s820_s0, 1536 }
  0x15   : > { %p506_p0 = scmp.lt.u32.totalorder %s693_s26, %s820_s0  ;;  %p507_p1 = scmp.lt.u32.totalorder %s505_s6, %s500_s3 }
  0x16   : > { %p503_p12 = pnand %p502_p11, %p501_p10  ;;  %p509_p3 = scmp.lt.u32.totalorder %s500_s3, %s693_s26 }
  0x17   : > { %p508_p2 = por %p507_p1, %p506_p0 }
  0x18   : > { %p504_p13 = pneg %p503_p12 }
  0x19   : > { %p510_p4 = por %p509_p3, %p508_p2 }
  0x1b   : > { %p511_p5 = pnand %p510_p4, %p504_p13 }
  0x1d   : > { %514 = shalt.err (!%p511_p5)
}
  0x1e   : > { %s515_s9 = scalar_lea.vmem %s699_s29, 768  ;;  %s616_s15 = smov [#allocation3]  }
  0x1f   : > { %p516_p6 = scmp.ne.s32.totalorder %s699_s29, %s515_s9  ;;  %s520_s17 = sshll.u32 %s616_s15, 4  ;;  %s521_s17 = int_to_ptr.vmem [resolvable:$false] %s520_s17 }
  0x20   : > { %s522_s18 = scalar_lea.vmem %s521_s17, 1536  ;;  %p523_p12 = scmp.lt.s32.totalorder %s699_s29, %s521_s17 }
  0x21   : > { %p518_p8 = pnand %p516_p6, %p502_p11  ;;  %p524_p0 = scmp.lt.s32.totalorder %s522_s18, %s515_s9 }
  0x23   : > { %p519_p10 = pneg %p518_p8  ;;  %p525_p1 = por %p524_p0, %p523_p12 }
  0x25   : > { %p526_p2 = pnand %p525_p1, %p519_p10 }
  0x27   : > { %529 = shalt.err (!%p526_p2)
}
  0x28   : > { %s617_s22 = smov 128   ;;  %s618_s23 = smov 8  }
  0x29   : > { %442 = dma.hbm_to_vmem [thread:$0]  (!%p695_p9), %s693_s26, 768, %s699_s29, %s131_s30, %s617_s22, %s617_s22, %s618_s23  }
  0x2a   : > { %p418_p13 = scmp.ge.s32.totalorder %s614_s14, 1  ;;  %p174_p3 = scmp.lt.s32.totalorder %s614_s14, 3 }
  0x2b   : > { %s415_s24 = sshll.u32 %s686_s21, 2  ;;  %s427_s28 = sshll.u32 %s610_s13, 6 }
  0x2c   : > { %p732_p4 = pnand %p418_p13, %p174_p3  ;;  %s157_s3 = scalar_lea.vmem [#allocation5], %s415_s24 }
  0x2d   : > { %s166_s4 = sshll.u32 %s157_s3, 4  ;;  %s740_s7 = scalar_lea.hbm %s821_s1, %s427_s28  ;;  %s742_s4 = int_to_ptr.vmem [resolvable:$true] %s166_s4 }
  0x2e   : > { %s154_s26 = scalar_lea.sflag [#allocation6], %s686_s21  ;;  %s530_s29 = scalar_lea.hbm %s740_s7, 64 }
  0x2f   : > { %p531_p5 = scmp.ne.s32.totalorder %s740_s7, %s530_s29  ;;  %s535_s9 = scalar_lea.hbm %s821_s1, 128 }
  0x30   : > { %p536_p10 = scmp.lt.u32.totalorder %s740_s7, %s821_s1  ;;  %p537_p12 = scmp.lt.u32.totalorder %s535_s9, %s530_s29 }
  0x31   : > { %p533_p6 = pnand %p531_p5, %p502_p11  ;;  %p539_p1 = scmp.lt.u32.totalorder %s530_s29, %s740_s7 }
  0x32   : > { %p538_p0 = por %p537_p12, %p536_p10 }
  0x33   : > { %p534_p8 = pneg %p533_p6 }
  0x34   : > { %p540_p2 = por %p539_p1, %p538_p0 }
  0x36   : > { %p541_p13 = pnand %p540_p2, %p534_p8 }
  0x38   : > { %544 = shalt.err (!%p541_p13)
}
  0x39   : > { %s545_s18 = scalar_lea.vmem %s742_s4, 64  ;;  %s619_s22 = smov [#allocation5]  }
  0x3a   : > { %p546_p3 = scmp.ne.s32.totalorder %s742_s4, %s545_s18  ;;  %s550_s23 = sshll.u32 %s619_s22, 4  ;;  %s551_s23 = int_to_ptr.vmem [resolvable:$false] %s550_s23 }
  0x3b   : > { %s552_s24 = scalar_lea.vmem %s551_s23, 128  ;;  %p553_p7 = scmp.lt.s32.totalorder %s742_s4, %s551_s23 }
  0x3c   : > { %p548_p5 = pnand %p546_p3, %p502_p11  ;;  %p554_p10 = scmp.lt.s32.totalorder %s552_s24, %s545_s18 }
  0x3e   : > { %p549_p6 = pneg %p548_p5  ;;  %p555_p12 = por %p554_p10, %p553_p7 }
  0x40   : > { %p556_p0 = pnand %p555_p12, %p549_p6 }
  0x42   : > { %559 = shalt.err (!%p556_p0)
}
  0x43   : > { %s620_s28 = smov 32   ;;  %s621_s3 = smov 2  }
  0x44   : > { %445 = dma.hbm_to_vmem [thread:$0]  (!%p695_p9), %s740_s7, 64, %s742_s4, %s154_s26, %s620_s28, %s620_s28, %s621_s3  }
  0x45   : > { %178 = sbr.rel (%p732_p4) target bundleno = 259 (0x103), region = 28  ;;  %s180_s5 = sand.u32 (!%p732_p4), 1, %s598_s10  }
  0x46   : > { %s434_s6 = smul.u32 (!%p732_p4), 48, %s180_s5  ;;  %s181_s29 = scalar_lea.sflag (!%p732_p4), [#allocation4], %s180_s5 }
  0x47   : > { %p827_p7 = scmp.ne.s32.totalorder (!%p732_p4), %s824_s19, 0 }
  0x48   : > { %s773_s30 = scalar_lea.vmem (!%p732_p4), [#allocation3], %s434_s6 }
  0x4c   : > { %585 = dma.done.wait (%p827_p7), %s181_s29, 768  }
  0x4d   : > { %587 = vsyncadd (%p827_p7), %s181_s29, 4294966528  ;;  %s419_s8 = sshll.u32 %s180_s5, 2  ;;  %s190_s27 = scalar_lea.sflag [#allocation6], %s180_s5 }
  0x4e   : > { %s193_s21 = scalar_lea.vmem [#allocation5], %s419_s8 }
  0x4f   : > { %589 = dma.done.wait (%p827_p7), %s190_s27, 64  }
  0x50   : > { %591 = vsyncadd (%p827_p7), %s190_s27, 4294967232  ;;  %vm228_vm0 = vcmask 124928   ;;  %v622_v0 = vmov 0.0   ;;  %v429_v1 = vld [vmem:[%s193_s21] sm:$0xf]   ;;  %v235_v3 = vld [vmem:[%s773_s30 + $0x8] sm:$0xff] }
  0x51   : > { %229 = vst.msk [vmem:[#allocation2] sm:$0x7] %vm228_vm0, %v622_v0  ;;  %v234_v2 = vld [vmem:[%s773_s30] sm:$0xff]  ;;  %v430_v4 = vunpack.c.0.s8 %v429_v1  ;;  %v431_v5 = vunpack.c.1.s8 %v429_v1  ;;  %v239_v7 = vsub.f32 1.0, %v235_v3  ;;  %v421_v8 = vld [vmem:[%s773_s30 + $0x10] sm:$0xff]  ;;  %v422_v9 = vld [vmem:[%s773_s30 + $0x18] sm:$0xff] }
  0x52   : > { %v238_v6 = vsub.f32 1.0, %v234_v2  ;;  %vm242_vm1 = vcmask 130048   ;;  %v261_v10 = vsub.f32 1.0, %v421_v8  ;;  %v262_v11 = vsub.f32 1.0, %v422_v9  ;;  %v423_v16 = vld [vmem:[%s773_s30 + $0x20] sm:$0xff]  ;;  %v424_v17 = vld [vmem:[%s773_s30 + $0x28] sm:$0xff] }
  0x53   : > { %vm236_vm2 = vcmp.eq.s32.totalorder %v430_v4, 0  ;;  %vm237_vm3 = vcmp.eq.s32.totalorder %v431_v5, 0  ;;  %vm259_vm4 = vcmp.eq.s32.totalorder %v430_v4, 1  ;;  %vm260_vm5 = vcmp.eq.s32.totalorder %v431_v5, 1  ;;  %p220_p9 = scmp.lt.s32.totalorder %s606_s12, 1 }
  0x54   : > { %v240_v12 = vsel %vm236_vm2, %v238_v6, %v234_v2  ;;  %v241_v13 = vsel %vm237_vm3, %v239_v7, %v235_v3  ;;  %v263_v14 = vsel %vm259_vm4, %v261_v10, %v421_v8  ;;  %v264_v15 = vsel %vm260_vm5, %v262_v11, %v422_v9 }
  0x55   : > { %v243_v18 = vsel %vm242_vm1, %v240_v12, 0.0  ;;  %v244_v19 = vsel %vm242_vm1, %v241_v13, 0.0  ;;  %v265_v20 = vsel %vm242_vm1, %v263_v14, 0.0  ;;  %v266_v21 = vsel %vm242_vm1, %v264_v15, 0.0  ;;  %s836_s12 = smov (!%p220_p9, %s606_s12), 1 }
  0x56   : > { %v245_v22 = vadd.f32 %v244_v19, %v243_v18  ;;  %v267_v23 = vadd.f32 %v266_v21, %v265_v20  ;;  %vm280_vm6 = vcmp.eq.s32.totalorder %v430_v4, 2  ;;  %vm281_vm7 = vcmp.eq.s32.totalorder %v431_v5, 2  ;;  %s420_s19 = sshll.u32 %s836_s12, 2 }
  0x57   : > { %v282_v24 = vsub.f32 1.0, %v423_v16  ;;  %v283_v25 = vsub.f32 1.0, %v424_v17  ;;  %vm254_vm8 = vcmask 122880   ;;  %s223_s7 = scalar_lea.vmem %s822_s2, %s420_s19  ;;  %vm306_vm9 = vcmask 2048  }
  0x58   : > { %v246_v26 = vrot.slane %v245_v22, 4  ;;  %v268_v27 = vrot.slane %v267_v23, 4  ;;  %v252_v43 = vld [vmem:[#allocation2] sm:$0x1]  ;;  %v274_v44 = vld [vmem:[#allocation2 + $0x1] sm:$0x1] }
  0x59   : > { %v284_v28 = vsel %vm280_vm6, %v282_v24, %v423_v16  ;;  %v285_v29 = vsel %vm281_vm7, %v283_v25, %v424_v17  ;;  %v295_v52 = vld [vmem:[#allocation2 + $0x2] sm:$0x1] }
  0x5a   : > { %v247_v30 = vadd.f32 %v246_v26, %v245_v22  ;;  %v269_v31 = vadd.f32 %v268_v27, %v267_v23  ;;  %v286_v32 = vsel %vm242_vm1, %v284_v28, 0.0  ;;  %v287_v33 = vsel %vm242_vm1, %v285_v29, 0.0 }
  0x5b   : > { %v288_v34 = vadd.f32 %v287_v33, %v286_v32 }
  0x5c   : > { %v248_v35 = vrot.slane %v247_v30, 2  ;;  %v270_v36 = vrot.slane %v269_v31, 2 }
  0x5d   : > { %v289_v37 = vrot.slane %v288_v34, 4 }
  0x5e   : > { %v249_v38 = vadd.f32 %v248_v35, %v247_v30  ;;  %v271_v39 = vadd.f32 %v270_v36, %v269_v31 }
  0x5f   : > { %v290_v40 = vadd.f32 %v289_v37, %v288_v34 }
  0x60   : > { %v250_v41 = vrot.slane %v249_v38, 1  ;;  %v272_v42 = vrot.slane %v271_v39, 1 }
  0x61   : > { %v291_v45 = vrot.slane %v290_v40, 2 }
  0x62   : > { %v251_v46 = vadd.f32 %v250_v41, %v249_v38  ;;  %v273_v47 = vadd.f32 %v272_v42, %v271_v39 }
  0x63   : > { %v292_v48 = vadd.f32 %v291_v45, %v290_v40 }
  0x64   : > { %v253_v49 = vadd.f32 %v252_v43, %v251_v46  ;;  %v275_v50 = vadd.f32 %v274_v44, %v273_v47 }
  0x65   : > { %v293_v51 = vrot.slane %v292_v48, 1 }
  0x66   : > { %255 = vst.msk [vmem:[#allocation2] sm:$0x1] %vm254_vm8, %v253_v49  ;;  %276 = vst.msk [vmem:[#allocation2 + $0x1] sm:$0x1] %vm254_vm8, %v275_v50 }
  0x67   : > { %v294_v53 = vadd.f32 %v293_v51, %v292_v48 }
  0x69   : > { %v296_v54 = vadd.f32 %v295_v52, %v294_v53 }
  0x6b   : > { %297 = vst.msk [vmem:[#allocation2 + $0x2] sm:$0x1] %vm254_vm8, %v296_v54 }
  0x72   : > { %v301_v55 = vld [vmem:[#allocation2] sm:$0x7] }
  0x73   : > { %v303_v56 = vsel %vm228_vm0, %v301_v55, 0.0 }
  0x74   : > { %304 = vadd.xlane.f32.xlu0 %v303_v56 }
 0x101   : > { %v305_v57 = vpop.xlane.xlu0 %304 }
 0x102   : > { %307 = vst.msk [vmem:[%s223_s7] sm:$0x7] %vm306_vm9, %v305_v57 }
 0x103 PF: > { %s18_s14 = sadd.s32 1, %s614_s14   ;;  %s828_s9 = smov %s598_s10 }
 0x104   : > { %p15_p11 = scmp.ge.s32.totalorder %s18_s14, 4   ;;  %s829_s10 = smov %s602_s11 }
 0x105   : > { %s830_s11 = smov %s683_s20  ;;  %s831_s12 = smov %s610_s13 }
 0x106   : > { %s832_s13 = smov %s834_s16  ;;  %17 = sbr.rel (!%p15_p11) target bundleno = 6 (0x6), region = 91 }
 0x10d   :  { %327 = vsyncpa [#allocation4], 1 }
 0x10e   :  { %329 = vsyncpa [#allocation4 + $0x1], 1 }
 0x10f   :  { %330 = vsyncpa [#allocation6], 1 }
 0x110   :  { %332 = vsyncpa [#allocation6 + $0x1], 1 }

</bundles_post_ra>
